<compile_context>
chip_gen: v7x
topology: tpu7x:2x2x1
jax: 0.10.0
libtpu: 0.0.40
codegen_flags: <defaults>
</compile_context>

<pallas_src>
import functools

import jax
import jax.numpy as jnp
from jax.experimental import pallas as pl
from jax.experimental.pallas import tpu as pltpu


def _round_up(x: int, m: int) -> int:
    return ((x + m - 1) // m) * m


def policy_kernel(x_ref, w1_ref, b1_ref, w2_ref, b2_ref, out_ref):
    # fc1: x @ W1 (bf16 in, f32 acc) + b1, ReLU.  Bias is a (1, H) row that
    # broadcasts over the batch tile; it is loaded exactly once per grid step.
    x = x_ref[...]                                               # (TB, S) bf16
    h = jnp.dot(x, w1_ref[...], preferred_element_type=jnp.float32) + b1_ref[...]
    h = jnp.maximum(h, 0.0).astype(jnp.bfloat16)                 # (TB, H) bf16

    # fc2: h @ W2 (bf16 in, f32 acc) + b2.  Padded action columns carry a
    # -1e30 bias so they vanish in the softmax.
    logits = jnp.dot(h, w2_ref[...], preferred_element_type=jnp.float32) + b2_ref[...]

    # Softmax over the action dimension, fully in f32 (VPU/EUP f32 path is
    # the safe choice on v5e).  Divide goes through the EUP reciprocal slot.
    m = jnp.max(logits, axis=-1, keepdims=True)
    e = jnp.exp(logits - m)
    denom = jnp.sum(e, axis=-1, keepdims=True)
    out_ref[...] = (e * pl.reciprocal(denom, approx=True)).astype(out_ref.dtype)


@functools.partial(jax.jit, static_argnames=("tb_max",))
def policy_forward(x, w1, b1, w2, b2, *, tb_max: int = 512):
    """x: (B, s_size) f32; w1: (s_size, h_size); b1: (1, h_size);
    w2: (h_size, a_size); b2: (1, a_size).  Returns (B, a_size) f32 probs."""
    B, s_size = x.shape
    h_size, a_size = w2.shape

    # Hardware-aligned padded sizes (lanes = 128, f32 sublanes = 8).
    S = _round_up(s_size, 128)
    H = _round_up(h_size, 128)
    A = _round_up(a_size, 128)
    TB = min(tb_max, _round_up(B, 8))          # batch tile (multiple of 8)
    Bp = _round_up(B, TB)

    # Pad + cast.  Zero padding is exact for the matmuls; the padded action
    # bias is -1e30 so padded logits never contribute to the softmax.
    bf16 = jnp.bfloat16
    xp = jnp.zeros((Bp, S), bf16).at[:B, :s_size].set(x.astype(bf16))
    w1p = jnp.zeros((S, H), bf16).at[:s_size, :h_size].set(w1.astype(bf16))
    b1p = jnp.zeros((1, H), jnp.float32).at[:, :h_size].set(b1.astype(jnp.float32))
    w2p = jnp.zeros((H, A), bf16).at[:h_size, :a_size].set(w2.astype(bf16))
    b2p = jnp.full((1, A), -1e30, jnp.float32).at[:, :a_size].set(
        b2.astype(jnp.float32))

    # VMEM budget: double-buffered x/out tiles + resident weights (counted 2x
    # for safety), clamped to stay well inside v5e/v6e/v7x scoped limits.
    needed = 2 * (TB * S * 2) + 2 * (TB * A * 4) + 2 * (
        S * H * 2 + H * A * 2 + H * 4 + A * 4)
    vmem_limit = int(min(max(2 * needed, 16 * 2**20), 32 * 2**20))

    grid = (Bp // TB,)
    out_padded = pl.pallas_call(
        policy_kernel,
        out_shape=jax.ShapeDtypeStruct((Bp, A), jnp.float32),
        grid=grid,
        in_specs=[
            pl.BlockSpec((TB, S), lambda i: (i, 0)),   # x: tiled over batch
            pl.BlockSpec((S, H), lambda i: (0, 0)),    # W1: VMEM-resident
            pl.BlockSpec((1, H), lambda i: (0, 0)),    # b1: VMEM-resident
            pl.BlockSpec((H, A), lambda i: (0, 0)),    # W2: VMEM-resident
            pl.BlockSpec((1, A), lambda i: (0, 0)),    # b2: VMEM-resident
        ],
        out_specs=pl.BlockSpec((TB, A), lambda i: (i, 0)),  # lane-dense output
        compiler_params=pltpu.CompilerParams(
            dimension_semantics=("parallel",),
            vmem_limit_bytes=vmem_limit,
        ),
    )(xp, w1p, b1p, w2p, b2p)

    return out_padded[:B, :a_size]


def init_params(key, s_size, h_size, a_size):
    """Deterministic init mimicking nn.Linear's U(-1/sqrt(fan_in), 1/sqrt(fan_in)).
    Weights stored as (in, out) — transpose of PyTorch's layout — so the
    kernel does plain x @ W."""
    k1, k2, k3, k4 = jax.random.split(key, 4)
    bound1 = 1.0 / jnp.sqrt(s_size)
    bound2 = 1.0 / jnp.sqrt(h_size)
    w1 = jax.random.uniform(k1, (s_size, h_size), jnp.float32, -bound1, bound1)
    b1 = jax.random.uniform(k2, (1, h_size), jnp.float32, -bound1, bound1)
    w2 = jax.random.uniform(k3, (h_size, a_size), jnp.float32, -bound2, bound2)
    b2 = jax.random.uniform(k4, (1, a_size), jnp.float32, -bound2, bound2)
    return w1, b1, w2, b2


def reference_forward_f32(x, w1, b1, w2, b2):
    h = jnp.maximum(x @ w1 + b1, 0.0)
    return jax.nn.softmax(h @ w2 + b2, axis=1)


def reference_forward_bf16(x, w1, b1, w2, b2):
    """Mirrors the kernel's bf16-in / f32-accumulate dtype strategy."""
    xb, w1b, w2b = (a.astype(jnp.bfloat16) for a in (x, w1, w2))
    h = jnp.maximum(
        jnp.dot(xb, w1b, preferred_element_type=jnp.float32) + b1, 0.0)
    logits = jnp.dot(h.astype(jnp.bfloat16), w2b,
                     preferred_element_type=jnp.float32) + b2
    return jax.nn.softmax(logits, axis=1)


if __name__ == "__main__":
    # Small shapes consistent with the module (CartPole-like policy).
    B, s_size, h_size, a_size = 2, 8, 32, 4

    key = jax.random.PRNGKey(0)
    k_params, k_x, k_x2 = jax.random.split(key, 3)
    w1, b1, w2, b2 = init_params(k_params, s_size, h_size, a_size)
    x = jax.random.normal(k_x, (B, s_size), jnp.float32)

    probs = policy_forward(x, w1, b1, w2, b2)
    jax.block_until_ready(probs)

    ref_bf16 = reference_forward_bf16(x, w1, b1, w2, b2)
    ref_f32 = reference_forward_f32(x, w1, b1, w2, b2)
    assert probs.shape == (B, a_size)
    assert jnp.allclose(probs, ref_bf16, atol=3e-3, rtol=3e-3)
    assert jnp.allclose(probs, ref_f32, atol=3e-2)
    assert jnp.allclose(jnp.sum(probs, axis=1), 1.0, atol=5e-3)

    # Larger, non-aligned batch exercises the tiled grid + padding path
    # (grid of 2 steps, batch padded 1000 -> 1024).
    B2 = 1000
    x2 = jax.random.normal(k_x2, (B2, s_size), jnp.float32)
    probs2 = policy_forward(x2, w1, b1, w2, b2)
    jax.block_until_ready(probs2)
    ref2 = reference_forward_bf16(x2, w1, b1, w2, b2)
    assert probs2.shape == (B2, a_size)
    assert jnp.allclose(probs2, ref2, atol=3e-3, rtol=3e-3)
    assert jnp.allclose(jnp.sum(probs2, axis=1), 1.0, atol=5e-3)

    print("KERNEL_OK")
</pallas_src>

<mosaic_0001>
module attributes {stable_mosaic.version = 11 : i64} {
  func.func @policy_kernel(%arg0: i32, %arg1: memref<8x128xbf16, #tpu.memory_space<vmem>>, %arg2: memref<128x128xbf16, #tpu.memory_space<vmem>>, %arg3: memref<1x128xf32, #tpu.memory_space<vmem>>, %arg4: memref<128x128xbf16, #tpu.memory_space<vmem>>, %arg5: memref<1x128xf32, #tpu.memory_space<vmem>>, %arg6: memref<8x128xf32, #tpu.memory_space<vmem>>) attributes {dimension_semantics = [#tpu.dimension_semantics<parallel>], iteration_bounds = array<i64: 1>, scalar_prefetch = 0 : i64, scratch_operands = 0 : i64, tpu.core_type = #tpu.core_type<tc>, window_params = [{transform_indices = @transform_0, window_bounds = array<i64: 8, 128>}, {pipeline_mode = #tpu.pipeline_mode<synchronous>, transform_indices = @transform_1, window_bounds = array<i64: 128, 128>}, {pipeline_mode = #tpu.pipeline_mode<synchronous>, transform_indices = @transform_2, window_bounds = array<i64: 1, 128>}, {pipeline_mode = #tpu.pipeline_mode<synchronous>, transform_indices = @transform_3, window_bounds = array<i64: 128, 128>}, {pipeline_mode = #tpu.pipeline_mode<synchronous>, transform_indices = @transform_4, window_bounds = array<i64: 1, 128>}, {transform_indices = @transform_5, window_bounds = array<i64: 8, 128>}]} {
    %c0 = arith.constant 0 : index
    %c0_0 = arith.constant 0 : index
    %0 = vector.load %arg1[%c0, %c0_0] : memref<8x128xbf16, #tpu.memory_space<vmem>>, vector<8x128xbf16>
    %c0_1 = arith.constant 0 : index
    %c0_2 = arith.constant 0 : index
    %1 = vector.load %arg2[%c0_1, %c0_2] : memref<128x128xbf16, #tpu.memory_space<vmem>>, vector<128x128xbf16>
    %cst = arith.constant dense<0.000000e+00> : vector<8x128xf32>
    %2 = tpu.matmul %0, %1, %cst {dimension_numbers = #tpu.dot_dimension_numbers<[1], [0], [0], [1], [0, 0, 1, 1], [], []>} : vector<8x128xbf16>, vector<128x128xbf16>, vector<8x128xf32> -> vector<8x128xf32>
    %c0_3 = arith.constant 0 : index
    %c0_4 = arith.constant 0 : index
    %3 = vector.load %arg3[%c0_3, %c0_4] : memref<1x128xf32, #tpu.memory_space<vmem>>, vector<1x128xf32>
    %4 = vector.broadcast %3 : vector<1x128xf32> to vector<8x128xf32>
    %5 = arith.addf %2, %4 : vector<8x128xf32>
    %cst_5 = arith.constant 0.000000e+00 : f32
    %6 = vector.broadcast %cst_5 : f32 to vector<8x128xf32>
    %7 = arith.maximumf %5, %6 : vector<8x128xf32>
    %8 = arith.truncf %7 : vector<8x128xf32> to vector<8x128xbf16>
    %c0_6 = arith.constant 0 : index
    %c0_7 = arith.constant 0 : index
    %9 = vector.load %arg4[%c0_6, %c0_7] : memref<128x128xbf16, #tpu.memory_space<vmem>>, vector<128x128xbf16>
    %cst_8 = arith.constant dense<0.000000e+00> : vector<8x128xf32>
    %10 = tpu.matmul %8, %9, %cst_8 {dimension_numbers = #tpu.dot_dimension_numbers<[1], [0], [0], [1], [0, 0, 1, 1], [], []>} : vector<8x128xbf16>, vector<128x128xbf16>, vector<8x128xf32> -> vector<8x128xf32>
    %c0_9 = arith.constant 0 : index
    %c0_10 = arith.constant 0 : index
    %11 = vector.load %arg5[%c0_9, %c0_10] : memref<1x128xf32, #tpu.memory_space<vmem>>, vector<1x128xf32>
    %12 = vector.broadcast %11 : vector<1x128xf32> to vector<8x128xf32>
    %13 = arith.addf %10, %12 : vector<8x128xf32>
    %cst_11 = arith.constant dense<0xFF800000> : vector<8xf32>
    %14 = vector.multi_reduction <maximumf>, %13, %cst_11 [1] : vector<8x128xf32> to vector<8xf32>
    %15 = vector.shape_cast %14 : vector<8xf32> to vector<8x1xf32>
    %16 = vector.broadcast %15 : vector<8x1xf32> to vector<8x128xf32>
    %17 = arith.subf %13, %16 : vector<8x128xf32>
    %18 = math.exp %17 : vector<8x128xf32>
    %cst_12 = arith.constant dense<0.000000e+00> : vector<8xf32>
    %19 = vector.multi_reduction <add>, %18, %cst_12 [1] : vector<8x128xf32> to vector<8xf32>
    %20 = vector.shape_cast %19 : vector<8xf32> to vector<8x1xf32>
    %21 = tpu.reciprocal %20 {approx = true} : vector<8x1xf32> -> vector<8x1xf32>
    %22 = vector.broadcast %21 : vector<8x1xf32> to vector<8x128xf32>
    %23 = arith.mulf %18, %22 : vector<8x128xf32>
    %c0_13 = arith.constant 0 : index
    %c0_14 = arith.constant 0 : index
    %24 = vector.load %arg6[%c0_13, %c0_14] : memref<8x128xf32, #tpu.memory_space<vmem>>, vector<8x128xf32>
    tpu.vector_store %arg6[%c0_13, %c0_14], %23 {strides = array<i32>} : memref<8x128xf32, #tpu.memory_space<vmem>>, vector<8x128xf32>,
    return
  }
  func.func @transform_0(%arg0: i32) -> (i32, i32) {
    %c0_i32 = arith.constant 0 : i32
    %c0_i32_0 = arith.constant 0 : i32
    return %arg0, %c0_i32 : i32, i32
  }
  func.func @transform_1(%arg0: i32) -> (i32, i32) {
    %c0_i32 = arith.constant 0 : i32
    %c0_i32_0 = arith.constant 0 : i32
    %c0_i32_1 = arith.constant 0 : i32
    return %c0_i32, %c0_i32_0 : i32, i32
  }
  func.func @transform_2(%arg0: i32) -> (i32, i32) {
    %c0_i32 = arith.constant 0 : i32
    %c0_i32_0 = arith.constant 0 : i32
    %c0_i32_1 = arith.constant 0 : i32
    return %c0_i32, %c0_i32_0 : i32, i32
  }
  func.func @transform_3(%arg0: i32) -> (i32, i32) {
    %c0_i32 = arith.constant 0 : i32
    %c0_i32_0 = arith.constant 0 : i32
    %c0_i32_1 = arith.constant 0 : i32
    return %c0_i32, %c0_i32_0 : i32, i32
  }
  func.func @transform_4(%arg0: i32) -> (i32, i32) {
    %c0_i32 = arith.constant 0 : i32
    %c0_i32_0 = arith.constant 0 : i32
    %c0_i32_1 = arith.constant 0 : i32
    return %c0_i32, %c0_i32_0 : i32, i32
  }
  func.func @transform_5(%arg0: i32) -> (i32, i32) {
    %c0_i32 = arith.constant 0 : i32
    %c0_i32_0 = arith.constant 0 : i32
    return %arg0, %c0_i32 : i32, i32
  }
}

</mosaic_0001>

<bundles_post_ra>
// kernel: policy_forward.1
= control target key start
LH: loop header
LB: loop body
LE: loop exit
PB: predicated region body
PF: predicated region fallthrough
CT: control target
= control target key end

     0   :  { %v358_v0 = vmov 0.0   ;;  %vm359_vm0 = vmmov 0   ;;  %s450_s1 = inlined_call_operand.vmem [shape: bf16[128,128], index: 1, kind: input, shape index: {}]   ;;  %s451_s3 = inlined_call_operand.vmem [shape: bf16[128,128], index: 3, kind: input, shape index: {}]   ;;  %s452_s0 = inlined_call_operand.vmem [shape: bf16[8,128], index: 0, kind: input, shape index: {}]   ;;  %s453_s2 = inlined_call_operand.vmem [shape: f32[1,128], index: 2, kind: input, shape index: {}]   ;;  %s454_s4 = inlined_call_operand.vmem [shape: f32[1,128], index: 4, kind: input, shape index: {}]   ;;  %s455_s5 = inlined_call_operand.vmem [shape: f32[8,128], index: 5, kind: output, shape index: {}]  }
   0x1   :  { %296 = vmatprep.subr.bf16.mxu0 %v358_v0  ;;  %v338_v1 = vld [vmem:[%s450_s1] sm:$0xff]   ;;  %312 = vmatprep.mubr.msk.bf16.mxu0 %vm359_vm0, %v358_v0  ;;  %v339_v2 = vld [vmem:[%s450_s1 + $0x8] sm:$0xff]   ;;  %v340_v3 = vld [vmem:[%s450_s1 + $0x10] sm:$0xff]  }
   0x2   :  { %316 = vmatprep.subr.bf16.mxu1 %v358_v0  ;;  %332 = vmatprep.mubr.msk.bf16.mxu1 %vm359_vm0, %v358_v0  ;;  %v346_v4 = vld [vmem:[%s451_s3] sm:$0xff]   ;;  %v341_v5 = vld [vmem:[%s450_s1 + $0x18] sm:$0xff]   ;;  %v347_v6 = vld [vmem:[%s451_s3 + $0x8] sm:$0xff]  }
   0x3   :  { %297 = vmatpush3.bf16.msra.mxu0 %v338_v1  ;;  %317 = vmatpush3.bf16.msra.mxu1 %v346_v4  ;;  %v342_v7 = vld [vmem:[%s450_s1 + $0x20] sm:$0xff]   ;;  %v348_v8 = vld [vmem:[%s451_s3 + $0x10] sm:$0xff]   ;;  %v343_v9 = vld [vmem:[%s450_s1 + $0x28] sm:$0xff]  }
   0x4   :  { %298 = vmatprep.subr.bf16.mxu0 %v358_v0  ;;  %318 = vmatprep.subr.bf16.mxu1 %v358_v0  ;;  %v349_v10 = vld [vmem:[%s451_s3 + $0x18] sm:$0xff]   ;;  %v344_v11 = vld [vmem:[%s450_s1 + $0x30] sm:$0xff]   ;;  %v350_v12 = vld [vmem:[%s451_s3 + $0x20] sm:$0xff]  }
   0x5   :  { %v345_v13 = vld [vmem:[%s450_s1 + $0x38] sm:$0xff]   ;;  %v351_v14 = vld [vmem:[%s451_s3 + $0x28] sm:$0xff]   ;;  %v21_v15 = vld [vmem:[%s452_s0] sm:$0xf] }
   0x6   :  { %v352_v16 = vld [vmem:[%s451_s3 + $0x30] sm:$0xff]   ;;  %v353_v17 = vld [vmem:[%s451_s3 + $0x38] sm:$0xff]   ;;  %v260_v18 = vld [vmem:[%s453_s2] ss:$0 sm:$0xff] }
   0x7   :  { %299 = vmatpush3.bf16.msra.mxu0 %v339_v2  ;;  %319 = vmatpush3.bf16.msra.mxu1 %v347_v6  ;;  %v269_v26 = vld [vmem:[%s454_s4] ss:$0 sm:$0xff] }
   0x8   :  { %300 = vmatprep.subr.bf16.mxu0 %v358_v0  ;;  %320 = vmatprep.subr.bf16.mxu1 %v358_v0 }
   0xb   :  { %301 = vmatpush3.bf16.msra.mxu0 %v340_v3  ;;  %321 = vmatpush3.bf16.msra.mxu1 %v348_v8 }
   0xc   :  { %302 = vmatprep.subr.bf16.mxu0 %v358_v0  ;;  %322 = vmatprep.subr.bf16.mxu1 %v358_v0 }
   0xf   :  { %303 = vmatpush3.bf16.msra.mxu0 %v341_v5  ;;  %323 = vmatpush3.bf16.msra.mxu1 %v349_v10 }
  0x10   :  { %304 = vmatprep.subr.bf16.mxu0 %v358_v0  ;;  %324 = vmatprep.subr.bf16.mxu1 %v358_v0 }
  0x13   :  { %305 = vmatpush3.bf16.msra.mxu0 %v342_v7  ;;  %325 = vmatpush3.bf16.msra.mxu1 %v350_v12 }
  0x14   :  { %306 = vmatprep.subr.bf16.mxu0 %v358_v0  ;;  %326 = vmatprep.subr.bf16.mxu1 %v358_v0 }
  0x17   :  { %307 = vmatpush3.bf16.msra.mxu0 %v343_v9  ;;  %327 = vmatpush3.bf16.msra.mxu1 %v351_v14 }
  0x18   :  { %308 = vmatprep.subr.bf16.mxu0 %v358_v0  ;;  %328 = vmatprep.subr.bf16.mxu1 %v358_v0 }
  0x1b   :  { %309 = vmatpush3.bf16.msra.mxu0 %v344_v11  ;;  %329 = vmatpush3.bf16.msra.mxu1 %v352_v16 }
  0x1c   :  { %310 = vmatprep.subr.bf16.mxu0 %v358_v0  ;;  %330 = vmatprep.subr.bf16.mxu1 %v358_v0 }
  0x1f   :  { %311 = vmatpush3.bf16.msra.mxu0 %v345_v13  ;;  %331 = vmatpush3.bf16.msra.mxu1 %v353_v17 }
  0x22   :  { %313 = vmatmul.mubr.bf16.vlgmr.msra.gmra.mrb[0].mxu0 %v21_v15 }
  0xf5   :  { %v127_v19 = vpop.f32.mrb[0].mxu0 }
  0xf6   :  { %v128_v20 = vadd.f32 %v260_v18, %v127_v19  ;;  %v314_v21 = vpop.f32.mrb[1].mxu0 }
  0xf7   :  { %v130_v22 = vpop.f32.mrb[2].mxu0 }
  0xf8   :  { %v133_v23 = vmax.f32 %v128_v20, 0.0  ;;  %v315_v24 = vpop.f32.mrb[3].mxu0 }
  0xfa   :  { %v134_v25 = vpack.c.bf16 %v133_v23, %v133_v23 }
  0xfc   :  { %333 = vmatmul.mubr.bf16.vlgmr.msra.gmra.mrb[0].mxu1 %v134_v25 }
 0x1cf   :  { %v240_v27 = vpop.f32.mrb[0].mxu1 }
 0x1d0   :  { %v241_v28 = vadd.f32 %v269_v26, %v240_v27  ;;  %v334_v29 = vpop.f32.mrb[1].mxu1 }
 0x1d1   :  { %v243_v30 = vpop.f32.mrb[2].mxu1 }
 0x1d2   :  { %246 = vmax.xlane.f32.xlu0 %v241_v28  ;;  %v335_v31 = vpop.f32.mrb[3].mxu1 }
 0x25f   :  { %v247_v32 = vpop.xlane.xlu0 %246 }
 0x260   :  { %v248_v33 = vsub.f32 %v241_v28, %v247_v32 }
 0x262   :  { %v249_v34 = vmul.f32 1.442695, %v248_v33 }
 0x264   :  { %354 = vpow2.f32 %v249_v34 }
 0x26e   :  { %v355_v35 = vpop.eup %354 }
 0x26f   :  { %251 = vadd.xlane.f32.xlu0 %v355_v35 }
 0x2fc   :  { %v252_v36 = vpop.xlane.xlu0 %251 }
 0x2fd   :  { %356 = vrcp.f32 %v252_v36 }
 0x307   :  { %v357_v37 = vpop.eup %356 }
 0x308   :  { %v254_v38 = vmul.f32 %v357_v37, %v355_v35 }
 0x30a   :  { %255 = vst [vmem:[%s455_s5] sm:$0xff] %v254_v38 }

</bundles_post_ra>
